<compile_context>
chip_gen: v5e
topology: v5e:2x2
jax: 0.10.0
libtpu: 0.0.40
codegen_flags: <defaults>
</compile_context>

<pallas_src>
import functools

import jax
import jax.numpy as jnp
from jax.experimental import pallas as pl
from jax.experimental.pallas import tpu as pltpu


def _round_up(v, m):
    return (v + m - 1) // m * m


def plan_tiles(num_nodes, tile_m=1024, tile_k=1024):
    """Pick stage-2 tile sizes and the padded node count.

    tile_m / tile_k must be multiples of 128 and divide max(tile_m, tile_k)
    (e.g. powers of two).  Small graphs collapse to a single tile.
    """
    assert tile_m % 128 == 0 and tile_k % 128 == 0
    tmax = max(tile_m, tile_k)
    assert tmax % tile_m == 0 and tmax % tile_k == 0
    n128 = _round_up(num_nodes, 128)
    if n128 <= tmax:
        # Whole graph fits in one tile along each axis.
        return n128, n128, n128
    n_pad = _round_up(num_nodes, tmax)
    return tile_m, tile_k, n_pad


def build_dense_adjacency(edge_index, edge_weight, num_nodes, padded_num_nodes=None):
    """Glue: scatter (src -> dst, w) edges into a dense (padded) [Np, Np] matrix.

    PyG GCNConv (no self-loops, no normalize) aggregates x_src * w into dst,
    so A[dst, src] = w (summed over duplicate edges).  Scattering directly
    into the padded buffer avoids a second full pass over A in the wrapper.
    """
    size = padded_num_nodes if padded_num_nodes is not None else num_nodes
    src = edge_index[0]
    dst = edge_index[1]
    adj = jnp.zeros((size, size), dtype=jnp.float32)
    adj = adj.at[dst, src].add(edge_weight.astype(jnp.float32))
    return adj


def _xw_kernel(x_ref, w1_ref, o_ref):
    # Stage 1: XW1 = X @ W1 for one row tile.  bf16 operands, f32 accumulation.
    o_ref[...] = jnp.dot(
        x_ref[...], w1_ref[...], preferred_element_type=jnp.float32
    ).astype(jnp.bfloat16)


def _prop_pool_kernel(a_ref, xw_ref, m_ref, o_ref, acc_ref, *, tk, xw_resident):
    # Stage 2 grid = (row tiles i [parallel], A column tiles k [reduction]).
    k = pl.program_id(1)

    @pl.when(k == 0)
    def _():
        acc_ref[...] = jnp.zeros_like(acc_ref)

    if xw_resident:
        # XW1 is fully resident in VMEM; slice the k-th reduction tile.
        off = pl.multiple_of(k * tk, tk)
        xw_k = xw_ref[pl.ds(off, tk), :]
    else:
        xw_k = xw_ref[...]

    # conv1 propagation:  acc += A[i, k] @ (X @ W1)[k]
    acc_ref[...] += jnp.dot(a_ref[...], xw_k, preferred_element_type=jnp.float32)

    @pl.when(k == pl.num_programs(1) - 1)
    def _():
        # ReLU in f32, then back to bf16 for the MXU.
        h1 = jnp.maximum(acc_ref[...], 0.0).astype(jnp.bfloat16)     # [TM, Hp]
        # conv2-propagation + global_mean_pool folded:  mean(A,0)[i-tile] @ h1_i
        # (the trailing @ W2 is hoisted out of the kernel -> lane-dense [1, Hp]).
        o_ref[0] = jnp.dot(m_ref[...], h1, preferred_element_type=jnp.float32)


@functools.partial(jax.jit, static_argnames=("num_nodes", "tile_m", "tile_k"))
def gcn_forward(adj, x, w1, w2, *, num_nodes, tile_m=1024, tile_k=1024):
    """adj: dense [n_pad, n_pad] (or [n, n]) f32 adjacency; x: [n, F]; w1: [F, H]; w2: [H, C]."""
    n = num_nodes
    f = x.shape[1]
    h = w1.shape[1]
    c = w2.shape[1]

    tm, tk, n_pad = plan_tiles(n, tile_m, tile_k)
    f_pad = _round_up(f, 128)
    h_pad = _round_up(h, 128)

    # ---- adjacency: already padded by the caller (preferred); pad otherwise.
    if adj.shape != (n_pad, n_pad):
        adj = jnp.zeros((n_pad, n_pad), jnp.float32).at[
            : adj.shape[0], : adj.shape[1]].set(adj)

    # Column-mean of A folds conv2's propagation + global_mean_pool into a
    # [1, N] mat-vec.  Divide by the *real* node count (padded rows/cols are 0).
    m = (jnp.sum(adj, axis=0, keepdims=True) / n).astype(jnp.bfloat16)   # [1, Np]
    a_bf = adj.astype(jnp.bfloat16)                                       # single cast pass

    x_bf = jnp.zeros((n_pad, f_pad), jnp.bfloat16).at[:n, :f].set(
        x.astype(jnp.bfloat16))
    w1_bf = jnp.zeros((f_pad, h_pad), jnp.bfloat16).at[:f, :h].set(
        w1.astype(jnp.bfloat16))

    n_i = n_pad // tm   # row tiles
    n_k = n_pad // tk   # reduction (A column) tiles

    # ---- stage 1: XW1 = X @ W1  -> bf16 [Np, Hp] (O(N*F*H), negligible) ----
    xw = pl.pallas_call(
        _xw_kernel,
        out_shape=jax.ShapeDtypeStruct((n_pad, h_pad), jnp.bfloat16),
        grid_spec=pltpu.PrefetchScalarGridSpec(
            num_scalar_prefetch=0,
            grid=(n_i,),
            in_specs=[
                pl.BlockSpec((tm, f_pad), lambda i: (i, 0)),
                pl.BlockSpec((f_pad, h_pad), lambda i: (0, 0)),
            ],
            out_specs=pl.BlockSpec((tm, h_pad), lambda i: (i, 0)),
        ),
        compiler_params=pltpu.CompilerParams(
            dimension_semantics=("parallel",)),
    )(x_bf, w1_bf)

    # ---- stage 2: stream bf16 A tiles, fuse relu + folded mean-pool --------
    xw_bytes = n_pad * h_pad * 2
    xw_resident = 2 * xw_bytes <= (16 << 20)   # keep XW1 fully in VMEM when cheap

    if xw_resident:
        xw_spec = pl.BlockSpec((n_pad, h_pad), lambda i, k: (0, 0))
        xw_vmem = 2 * xw_bytes
    else:
        xw_spec = pl.BlockSpec((tk, h_pad), lambda i, k: (k, 0))
        xw_vmem = 2 * tk * h_pad * 2

    # VMEM budget (double-buffered inputs + accumulator + output/misc).
    vmem_est = (2 * tm * tk * 2            # A tiles (bf16, double-buffered)
                + xw_vmem                  # XW1
                + tm * h_pad * 4           # f32 accumulator scratch
                + 2 * tm * 2               # m tiles
                + 2 * h_pad * 4            # output block
                + (2 << 20))               # slack
    compiler_kwargs = dict(dimension_semantics=("parallel", "arbitrary"))
    if vmem_est > (30 << 20):
        # Raise above the 32 MiB scoped default, but stay under v7x's 64 MiB.
        compiler_kwargs["vmem_limit_bytes"] = int(min(vmem_est + (8 << 20), 60 << 20))

    kernel = functools.partial(_prop_pool_kernel, tk=tk, xw_resident=xw_resident)

    partials = pl.pallas_call(
        kernel,
        out_shape=jax.ShapeDtypeStruct((n_i, 1, h_pad), jnp.float32),
        grid_spec=pltpu.PrefetchScalarGridSpec(
            num_scalar_prefetch=0,
            grid=(n_i, n_k),
            in_specs=[
                pl.BlockSpec((tm, tk), lambda i, k: (i, k)),     # A tile
                xw_spec,                                          # XW1 (resident or tiled)
                pl.BlockSpec((1, tm), lambda i, k: (0, i)),       # mean(A, 0) slice
            ],
            out_specs=pl.BlockSpec((1, 1, h_pad), lambda i, k: (i, 0, 0)),
            scratch_shapes=[pltpu.VMEM((tm, h_pad), jnp.float32)],
        ),
        compiler_params=pltpu.CompilerParams(**compiler_kwargs),
    )(a_bf, xw, m)

    # Tiny XLA glue: sum the [n_i, Hp] pooled partials and apply W2 in f32.
    pooled = jnp.sum(partials[:, 0, :], axis=0, keepdims=True)     # [1, Hp]
    out = jnp.dot(pooled[:, :h], w2)                               # [1, C]  (f32)
    return out


if __name__ == "__main__":
    key = jax.random.PRNGKey(0)

    num_nodes = 16
    nfeat = 8
    hidden_channels = 32
    nclass = 4
    num_edges = 32

    k_x, k_src, k_dst, k_w, k_w1, k_w2 = jax.random.split(key, 6)

    x = jax.random.normal(k_x, (num_nodes, nfeat), dtype=jnp.float32)

    src = jax.random.randint(k_src, (num_edges,), 0, num_nodes)
    dst = jax.random.randint(k_dst, (num_edges,), 0, num_nodes)
    edge_index = jnp.stack([src, dst], axis=0)
    edge_weight = jax.random.uniform(k_w, (num_edges,), dtype=jnp.float32)

    w1 = jax.random.normal(k_w1, (nfeat, hidden_channels), dtype=jnp.float32) * (
        1.0 / jnp.sqrt(nfeat))
    w2 = jax.random.normal(k_w2, (hidden_channels, nclass), dtype=jnp.float32) * (
        1.0 / jnp.sqrt(hidden_channels))

    # Build the dense adjacency directly at the padded size (one pass over A).
    _, _, n_pad = plan_tiles(num_nodes)
    adj_pad = build_dense_adjacency(edge_index, edge_weight, num_nodes, n_pad)

    out = gcn_forward(adj_pad, x, w1, w2, num_nodes=num_nodes)
    out = jax.block_until_ready(out)
    assert out.shape == (1, nclass)

    # Unpadded adjacency for the references.
    adj = adj_pad[:num_nodes, :num_nodes]

    # Reference 1: same folded algebra + bf16 casts the kernel uses (tight).
    def ref_bf16(adj, x, w1, w2):
        f32, bf = jnp.float32, jnp.bfloat16
        xw = jnp.dot(x.astype(bf), w1.astype(bf), preferred_element_type=f32)
        h1 = jnp.maximum(
            jnp.dot(adj.astype(bf), xw.astype(bf), preferred_element_type=f32),
            0.0)
        m = (jnp.sum(adj, axis=0, keepdims=True) / adj.shape[0]).astype(bf)
        pooled = jnp.dot(m, h1.astype(bf), preferred_element_type=f32)
        return jnp.dot(pooled, w2)

    ref1 = ref_bf16(adj, x, w1, w2)
    assert jnp.allclose(out, ref1, atol=2e-2, rtol=2e-2)

    # Reference 2: the original module's full-f32 math (loose: bf16 MXU inputs).
    ref2 = jnp.mean(adj @ (jnp.maximum(adj @ (x @ w1), 0.0) @ w2),
                    axis=0, keepdims=True)
    assert jnp.allclose(out, ref2, atol=1e-1, rtol=1e-1)

    print("KERNEL_OK")
</pallas_src>

<mosaic_0001>
module attributes {stable_mosaic.version = 11 : i64} {
  func.func @_xw_kernel(%arg0: i32, %arg1: memref<128x128xbf16, #tpu.memory_space<vmem>>, %arg2: memref<128x128xbf16, #tpu.memory_space<vmem>>, %arg3: memref<128x128xbf16, #tpu.memory_space<vmem>>) attributes {dimension_semantics = [#tpu.dimension_semantics<parallel>], iteration_bounds = array<i64: 1>, scalar_prefetch = 0 : i64, scratch_operands = 0 : i64, tpu.core_type = #tpu.core_type<tc>, window_params = [{transform_indices = @transform_0, window_bounds = array<i64: 128, 128>}, {pipeline_mode = #tpu.pipeline_mode<synchronous>, transform_indices = @transform_1, window_bounds = array<i64: 128, 128>}, {transform_indices = @transform_2, window_bounds = array<i64: 128, 128>}]} {
    %c0 = arith.constant 0 : index
    %c0_0 = arith.constant 0 : index
    %0 = vector.load %arg1[%c0, %c0_0] : memref<128x128xbf16, #tpu.memory_space<vmem>>, vector<128x128xbf16>
    %c0_1 = arith.constant 0 : index
    %c0_2 = arith.constant 0 : index
    %1 = vector.load %arg2[%c0_1, %c0_2] : memref<128x128xbf16, #tpu.memory_space<vmem>>, vector<128x128xbf16>
    %cst = arith.constant dense<0.000000e+00> : vector<128x128xf32>
    %2 = tpu.matmul %0, %1, %cst {dimension_numbers = #tpu.dot_dimension_numbers<[1], [0], [0], [1], [0, 0, 1, 1], [], []>} : vector<128x128xbf16>, vector<128x128xbf16>, vector<128x128xf32> -> vector<128x128xf32>
    %3 = arith.truncf %2 : vector<128x128xf32> to vector<128x128xbf16>
    %c0_3 = arith.constant 0 : index
    %c0_4 = arith.constant 0 : index
    %4 = vector.load %arg3[%c0_3, %c0_4] : memref<128x128xbf16, #tpu.memory_space<vmem>>, vector<128x128xbf16>
    tpu.vector_store %arg3[%c0_3, %c0_4], %3 {strides = array<i32>} : memref<128x128xbf16, #tpu.memory_space<vmem>>, vector<128x128xbf16>,
    return
  }
  func.func @transform_0(%arg0: i32) -> (i32, i32) {
    %c0_i32 = arith.constant 0 : i32
    %c0_i32_0 = arith.constant 0 : i32
    return %arg0, %c0_i32 : i32, i32
  }
  func.func @transform_1(%arg0: i32) -> (i32, i32) {
    %c0_i32 = arith.constant 0 : i32
    %c0_i32_0 = arith.constant 0 : i32
    %c0_i32_1 = arith.constant 0 : i32
    return %c0_i32, %c0_i32_0 : i32, i32
  }
  func.func @transform_2(%arg0: i32) -> (i32, i32) {
    %c0_i32 = arith.constant 0 : i32
    %c0_i32_0 = arith.constant 0 : i32
    return %arg0, %c0_i32 : i32, i32
  }
}

module attributes {stable_mosaic.version = 11 : i64} {
  func.func @_prop_pool_kernel(%arg0: i32, %arg1: i32, %arg2: memref<128x128xbf16, #tpu.memory_space<vmem>>, %arg3: memref<128x128xbf16, #tpu.memory_space<vmem>>, %arg4: memref<1x128xbf16, #tpu.memory_space<vmem>>, %arg5: memref<1x1x128xf32, #tpu.memory_space<vmem>>, %arg6: memref<128x128xf32, #tpu.memory_space<vmem>>) attributes {dimension_semantics = [#tpu.dimension_semantics<parallel>, #tpu.dimension_semantics<arbitrary>], iteration_bounds = array<i64: 1, 1>, scalar_prefetch = 0 : i64, scratch_operands = 1 : i64, tpu.core_type = #tpu.core_type<tc>, window_params = [{transform_indices = @transform_0, window_bounds = array<i64: 128, 128>}, {pipeline_mode = #tpu.pipeline_mode<synchronous>, transform_indices = @transform_1, window_bounds = array<i64: 128, 128>}, {transform_indices = @transform_2, window_bounds = array<i64: 1, 128>}, {transform_indices = @transform_3, window_bounds = array<i64: 1, 1, 128>}]} {
    %c0_i32 = arith.constant 0 : i32
    %0 = arith.cmpi eq, %arg1, %c0_i32 : i32
    %1 = arith.extui %0 : i1 to i32
    %c0_i32_0 = arith.constant 0 : i32
    %2 = arith.cmpi ne, %1, %c0_i32_0 : i32
    scf.if %2 {
      %cst_9 = arith.constant 0.000000e+00 : f32
      %15 = vector.broadcast %cst_9 : f32 to vector<128x128xf32>
      %c0_10 = arith.constant 0 : index
      %c0_11 = arith.constant 0 : index
      %16 = vector.load %arg6[%c0_10, %c0_11] : memref<128x128xf32, #tpu.memory_space<vmem>>, vector<128x128xf32>
      tpu.vector_store %arg6[%c0_10, %c0_11], %15 {strides = array<i32>} : memref<128x128xf32, #tpu.memory_space<vmem>>, vector<128x128xf32>,
    } else {
    }
    %c128_i32 = arith.constant 128 : i32
    %3 = arith.muli %arg1, %c128_i32 : i32
    %4 = tpu.assume_multiple %3, 128 : i32
    %5 = arith.index_cast %4 : i32 to index
    %c0 = arith.constant 0 : index
    %6 = vector.load %arg3[%5, %c0] : memref<128x128xbf16, #tpu.memory_space<vmem>>, vector<128x128xbf16>
    %c0_1 = arith.constant 0 : index
    %c0_2 = arith.constant 0 : index
    %7 = vector.load %arg6[%c0_1, %c0_2] : memref<128x128xf32, #tpu.memory_space<vmem>>, vector<128x128xf32>
    %c0_3 = arith.constant 0 : index
    %c0_4 = arith.constant 0 : index
    %8 = vector.load %arg2[%c0_3, %c0_4] : memref<128x128xbf16, #tpu.memory_space<vmem>>, vector<128x128xbf16>
    %cst = arith.constant dense<0.000000e+00> : vector<128x128xf32>
    %9 = tpu.matmul %8, %6, %cst {dimension_numbers = #tpu.dot_dimension_numbers<[1], [0], [0], [1], [0, 0, 1, 1], [], []>} : vector<128x128xbf16>, vector<128x128xbf16>, vector<128x128xf32> -> vector<128x128xf32>
    %10 = arith.addf %7, %9 : vector<128x128xf32>
    %c0_5 = arith.constant 0 : index
    %c0_6 = arith.constant 0 : index
    %11 = vector.load %arg6[%c0_5, %c0_6] : memref<128x128xf32, #tpu.memory_space<vmem>>, vector<128x128xf32>
    tpu.vector_store %arg6[%c0_5, %c0_6], %10 {strides = array<i32>} : memref<128x128xf32, #tpu.memory_space<vmem>>, vector<128x128xf32>,
    %c0_i32_7 = arith.constant 0 : i32
    %12 = arith.cmpi eq, %arg1, %c0_i32_7 : i32
    %13 = arith.extui %12 : i1 to i32
    %c0_i32_8 = arith.constant 0 : i32
    %14 = arith.cmpi ne, %13, %c0_i32_8 : i32
    scf.if %14 {
      %c0_9 = arith.constant 0 : index
      %c0_10 = arith.constant 0 : index
      %15 = vector.load %arg6[%c0_9, %c0_10] : memref<128x128xf32, #tpu.memory_space<vmem>>, vector<128x128xf32>
      %cst_11 = arith.constant 0.000000e+00 : f32
      %16 = vector.broadcast %cst_11 : f32 to vector<128x128xf32>
      %17 = arith.maximumf %15, %16 : vector<128x128xf32>
      %18 = arith.truncf %17 : vector<128x128xf32> to vector<128x128xbf16>
      %c0_12 = arith.constant 0 : index
      %c0_13 = arith.constant 0 : index
      %19 = vector.load %arg4[%c0_12, %c0_13] : memref<1x128xbf16, #tpu.memory_space<vmem>>, vector<1x128xbf16>
      %cst_14 = arith.constant dense<0.000000e+00> : vector<1x128xf32>
      %20 = tpu.matmul %19, %18, %cst_14 {dimension_numbers = #tpu.dot_dimension_numbers<[1], [0], [0], [1], [0, 0, 1, 1], [], []>} : vector<1x128xbf16>, vector<128x128xbf16>, vector<1x128xf32> -> vector<1x128xf32>
      %c0_15 = arith.constant 0 : index
      %c0_16 = arith.constant 0 : index
      %c0_17 = arith.constant 0 : index
      %21 = vector.load %arg5[%c0_15, %c0_16, %c0_17] : memref<1x1x128xf32, #tpu.memory_space<vmem>>, vector<1x1x128xf32>
      %22 = vector.shape_cast %21 : vector<1x1x128xf32> to vector<1x128xf32>
      %23 = vector.shape_cast %20 : vector<1x128xf32> to vector<1x1x128xf32>
      tpu.vector_store %arg5[%c0_15, %c0_16, %c0_17], %23 {strides = array<i32>} : memref<1x1x128xf32, #tpu.memory_space<vmem>>, vector<1x1x128xf32>,
    } else {
    }
    return
  }
  func.func @transform_0(%arg0: i32, %arg1: i32) -> (i32, i32) {
    %c0_i32 = arith.constant 0 : i32
    return %arg0, %arg1 : i32, i32
  }
  func.func @transform_1(%arg0: i32, %arg1: i32) -> (i32, i32) {
    %c0_i32 = arith.constant 0 : i32
    %c0_i32_0 = arith.constant 0 : i32
    %c0_i32_1 = arith.constant 0 : i32
    return %c0_i32, %c0_i32_0 : i32, i32
  }
  func.func @transform_2(%arg0: i32, %arg1: i32) -> (i32, i32) {
    %c0_i32 = arith.constant 0 : i32
    %c0_i32_0 = arith.constant 0 : i32
    return %c0_i32, %arg0 : i32, i32
  }
  func.func @transform_3(%arg0: i32, %arg1: i32) -> (i32, i32, i32) {
    %c0_i32 = arith.constant 0 : i32
    %c0_i32_0 = arith.constant 0 : i32
    %c0_i32_1 = arith.constant 0 : i32
    return %arg0, %c0_i32, %c0_i32_0 : i32, i32, i32
  }
}

</mosaic_0001>

<bundles_post_ra>
// kernel: gcn_forward.2
= control target key start
LH: loop header
LB: loop body
LE: loop exit
PB: predicated region body
PF: predicated region fallthrough
CT: control target
= control target key end

     0   :  { %s462_s1 = inlined_call_operand.vmem [shape: bf16[128,128], index: 1, kind: input, shape index: {}]   ;;  %s463_s0 = inlined_call_operand.vmem [shape: bf16[128,128], index: 0, kind: input, shape index: {}]   ;;  %s464_s2 = inlined_call_operand.vmem [shape: bf16[128,128], index: 2, kind: output, shape index: {}]  }
   0x1   :  { %v303_v0 = vld [vmem:[%s462_s1 + $0x38] sm:$0xff]  ;;  %v302_v1 = vld [vmem:[%s462_s1 + $0x30] sm:$0xff]  ;;  %v301_v2 = vld [vmem:[%s462_s1 + $0x28] sm:$0xff] }
   0x2   :  { %139 = vmatpush.bf16.msra.mxu0 %v303_v0  ;;  %351 = vmatpush.bf16.msra.mxu1 %v303_v0  ;;  %v300_v3 = vld [vmem:[%s462_s1 + $0x20] sm:$0xff]  ;;  %v299_v4 = vld [vmem:[%s462_s1 + $0x18] sm:$0xff]  ;;  %v298_v5 = vld [vmem:[%s462_s1 + $0x10] sm:$0xff] }
   0x3   :  { %352 = vmatpush.bf16.msra.mxu2 %v303_v0  ;;  %353 = vmatpush.bf16.msra.mxu3 %v303_v0  ;;  %v297_v6 = vld [vmem:[%s462_s1 + $0x8] sm:$0xff]  ;;  %v296_v7 = vld [vmem:[%s462_s1] sm:$0xff]  ;;  %v290_v9 = vld [vmem:[%s463_s0 + $0x10] sm:$0xff] }
   0x4   :  { %v288_v8 = vld [vmem:[%s463_s0] sm:$0xff]  ;;  %v294_v11 = vld [vmem:[%s463_s0 + $0x30] sm:$0xff]  ;;  %v289_v12 = vld [vmem:[%s463_s0 + $0x8] sm:$0xff] }
   0x5   :  { %v292_v10 = vld [vmem:[%s463_s0 + $0x20] sm:$0xff]  ;;  %v291_v13 = vld [vmem:[%s463_s0 + $0x18] sm:$0xff]  ;;  %v293_v14 = vld [vmem:[%s463_s0 + $0x28] sm:$0xff] }
   0x6   :  { %140 = vmatpush.bf16.msra.mxu0 %v302_v1  ;;  %354 = vmatpush.bf16.msra.mxu1 %v302_v1  ;;  %v295_v15 = vld [vmem:[%s463_s0 + $0x38] sm:$0xff] }
   0x7   :  { %355 = vmatpush.bf16.msra.mxu2 %v302_v1  ;;  %356 = vmatpush.bf16.msra.mxu3 %v302_v1 }
   0xa   :  { %141 = vmatpush.bf16.msra.mxu0 %v301_v2  ;;  %357 = vmatpush.bf16.msra.mxu1 %v301_v2 }
   0xb   :  { %358 = vmatpush.bf16.msra.mxu2 %v301_v2  ;;  %359 = vmatpush.bf16.msra.mxu3 %v301_v2 }
   0xe   :  { %142 = vmatpush.bf16.msra.mxu0 %v300_v3  ;;  %360 = vmatpush.bf16.msra.mxu1 %v300_v3 }
   0xf   :  { %361 = vmatpush.bf16.msra.mxu2 %v300_v3  ;;  %362 = vmatpush.bf16.msra.mxu3 %v300_v3 }
  0x12   :  { %143 = vmatpush.bf16.msra.mxu0 %v299_v4  ;;  %363 = vmatpush.bf16.msra.mxu1 %v299_v4 }
  0x13   :  { %364 = vmatpush.bf16.msra.mxu2 %v299_v4  ;;  %365 = vmatpush.bf16.msra.mxu3 %v299_v4 }
  0x16   :  { %144 = vmatpush.bf16.msra.mxu0 %v298_v5  ;;  %366 = vmatpush.bf16.msra.mxu1 %v298_v5 }
  0x17   :  { %367 = vmatpush.bf16.msra.mxu2 %v298_v5  ;;  %368 = vmatpush.bf16.msra.mxu3 %v298_v5 }
  0x1a   :  { %145 = vmatpush.bf16.msra.mxu0 %v297_v6  ;;  %369 = vmatpush.bf16.msra.mxu1 %v297_v6 }
  0x1b   :  { %370 = vmatpush.bf16.msra.mxu2 %v297_v6  ;;  %371 = vmatpush.bf16.msra.mxu3 %v297_v6 }
  0x1e   :  { %146 = vmatpush.bf16.msra.mxu0 %v296_v7  ;;  %372 = vmatpush.bf16.msra.mxu1 %v296_v7 }
  0x1f   :  { %373 = vmatpush.bf16.msra.mxu2 %v296_v7  ;;  %374 = vmatpush.bf16.msra.mxu3 %v296_v7 }
  0x21   :  { %147 = vmatmul.bf16.vlgmr.msra.gmra.mxu0 %v288_v8  ;;  %157 = vmatmul.bf16.vlgmr.msra.gmra.mxu1 %v290_v9 }
  0x22   :  { %167 = vmatmul.bf16.vlgmr.msra.gmra.mxu2 %v292_v10  ;;  %177 = vmatmul.bf16.vlgmr.msra.gmra.mxu3 %v294_v11 }
  0x31   :  { %152 = vmatmul.bf16.gmra.mxu0 %v289_v12  ;;  %162 = vmatmul.bf16.gmra.mxu1 %v291_v13 }
  0x32   :  { %172 = vmatmul.bf16.gmra.mxu2 %v293_v14  ;;  %182 = vmatmul.bf16.gmra.mxu3 %v295_v15 }
  0x9e   :  { %v148_v16 = vpop.f32.mrf.mxu0  ;;  %v158_v17 = vpop.f32.mrf.mxu1 }
  0xa5   :  { %v168_v18 = vpop.f32.mrf.mxu2  ;;  %v178_v19 = vpop.f32.mrf.mxu3 }
  0xa6   :  { %v150_v20 = vpop.f32.mrf.mxu0  ;;  %v160_v21 = vpop.f32.mrf.mxu1 }
  0xa7   :  { %v307_v22 = vpack.c.bf16 %v150_v20, %v148_v16  ;;  %v317_v23 = vpack.c.bf16 %v160_v21, %v158_v17 }
  0xa9   :  { %308 = vst [vmem:[%s464_s2] sm:$0xff] %v307_v22  }
  0xaa   :  { %345 = vst [vmem:[%s464_s2 + $0x10] sm:$0xff] %v317_v23  }
  0xad   :  { %v170_v24 = vpop.f32.mrf.mxu2  ;;  %v180_v25 = vpop.f32.mrf.mxu3 }
  0xae   :  { %v327_v26 = vpack.c.bf16 %v170_v24, %v168_v18  ;;  %v337_v27 = vpack.c.bf16 %v180_v25, %v178_v19  ;;  %v153_v28 = vpop.f32.mrf.mxu0  ;;  %v163_v29 = vpop.f32.mrf.mxu1 }
  0xb0   :  { %347 = vst [vmem:[%s464_s2 + $0x20] sm:$0xff] %v327_v26  }
  0xb1   :  { %349 = vst [vmem:[%s464_s2 + $0x30] sm:$0xff] %v337_v27  }
  0xb5   :  { %v173_v30 = vpop.f32.mrf.mxu2  ;;  %v183_v31 = vpop.f32.mrf.mxu3 }
  0xb6   :  { %v155_v32 = vpop.f32.mrf.mxu0  ;;  %v165_v33 = vpop.f32.mrf.mxu1 }
  0xb7   :  { %v312_v34 = vpack.c.bf16 %v155_v32, %v153_v28  ;;  %v322_v35 = vpack.c.bf16 %v165_v33, %v163_v29 }
  0xb9   :  { %344 = vst [vmem:[%s464_s2 + $0x8] sm:$0xff] %v312_v34  }
  0xba   :  { %346 = vst [vmem:[%s464_s2 + $0x18] sm:$0xff] %v322_v35  }
  0xbd   :  { %v175_v36 = vpop.f32.mrf.mxu2  ;;  %v185_v37 = vpop.f32.mrf.mxu3 }
  0xbe   :  { %v332_v38 = vpack.c.bf16 %v175_v36, %v173_v30  ;;  %v342_v39 = vpack.c.bf16 %v185_v37, %v183_v31 }
  0xc0   :  { %348 = vst [vmem:[%s464_s2 + $0x28] sm:$0xff] %v332_v38  }
  0xc1   :  { %350 = vst [vmem:[%s464_s2 + $0x38] sm:$0xff] %v342_v39  }

// kernel: gcn_forward.3
= control target key start
LH: loop header
LB: loop body
LE: loop exit
PB: predicated region body
PF: predicated region fallthrough
CT: control target
= control target key end

     0   :  { %s498_s1 = inlined_call_operand.vmem [shape: bf16[128,128], index: 1, kind: input, shape index: {}]   ;;  %s499_s0 = inlined_call_operand.vmem [shape: bf16[128,128], index: 0, kind: input, shape index: {}]   ;;  %s500_s2 = inlined_call_operand.vmem [shape: bf16[1,128], index: 2, kind: input, shape index: {}]   ;;  %s501_s3 = inlined_call_operand.vmem [shape: f32[1,1,128], index: 3, kind: output, shape index: {}]  }
   0x1   :  { %v399_v0 = vld [vmem:[%s498_s1 + $0x38] sm:$0xff]  ;;  %v398_v1 = vld [vmem:[%s498_s1 + $0x30] sm:$0xff]  ;;  %v397_v2 = vld [vmem:[%s498_s1 + $0x28] sm:$0xff] }
   0x2   :  { %409 = vmatpush.bf16.msra.mxu3 %v399_v0  ;;  %408 = vmatpush.bf16.msra.mxu2 %v399_v0  ;;  %v396_v3 = vld [vmem:[%s498_s1 + $0x20] sm:$0xff]  ;;  %v395_v4 = vld [vmem:[%s498_s1 + $0x18] sm:$0xff]  ;;  %v394_v5 = vld [vmem:[%s498_s1 + $0x10] sm:$0xff] }
   0x3   :  { %183 = vmatpush.bf16.msra.mxu0 %v399_v0  ;;  %v393_v6 = vld [vmem:[%s498_s1 + $0x8] sm:$0xff]  ;;  %v392_v7 = vld [vmem:[%s498_s1] sm:$0xff]  ;;  %v402_v9 = vld [vmem:[%s499_s0 + $0x10] sm:$0xff] }
   0x4   :  { %v405_v8 = vld [vmem:[%s499_s0 + $0x28] sm:$0xff]  ;;  %v400_v10 = vld [vmem:[%s499_s0] sm:$0xff]  ;;  %v406_v11 = vld [vmem:[%s499_s0 + $0x30] sm:$0xff] }
   0x5   :  { %v403_v12 = vld [vmem:[%s499_s0 + $0x18] sm:$0xff]  ;;  %v401_v13 = vld [vmem:[%s499_s0 + $0x8] sm:$0xff]  ;;  %v404_v15 = vld [vmem:[%s499_s0 + $0x20] sm:$0xff] }
   0x6   :  { %411 = vmatpush.bf16.msra.mxu3 %v398_v1  ;;  %410 = vmatpush.bf16.msra.mxu2 %v398_v1  ;;  %v407_v14 = vld [vmem:[%s499_s0 + $0x38] sm:$0xff]  ;;  %v307_v56 = vld [vmem:[%s500_s2] sm:$0x1] }
   0x7   :  { %184 = vmatpush.bf16.msra.mxu0 %v398_v1 }
   0xa   :  { %413 = vmatpush.bf16.msra.mxu3 %v397_v2  ;;  %412 = vmatpush.bf16.msra.mxu2 %v397_v2 }
   0xb   :  { %185 = vmatpush.bf16.msra.mxu0 %v397_v2 }
   0xe   :  { %415 = vmatpush.bf16.msra.mxu3 %v396_v3  ;;  %414 = vmatpush.bf16.msra.mxu2 %v396_v3 }
   0xf   :  { %186 = vmatpush.bf16.msra.mxu0 %v396_v3 }
  0x12   :  { %417 = vmatpush.bf16.msra.mxu3 %v395_v4  ;;  %416 = vmatpush.bf16.msra.mxu2 %v395_v4 }
  0x13   :  { %187 = vmatpush.bf16.msra.mxu0 %v395_v4 }
  0x16   :  { %419 = vmatpush.bf16.msra.mxu3 %v394_v5  ;;  %418 = vmatpush.bf16.msra.mxu2 %v394_v5 }
  0x17   :  { %188 = vmatpush.bf16.msra.mxu0 %v394_v5 }
  0x1a   :  { %421 = vmatpush.bf16.msra.mxu3 %v393_v6  ;;  %420 = vmatpush.bf16.msra.mxu2 %v393_v6 }
  0x1b   :  { %189 = vmatpush.bf16.msra.mxu0 %v393_v6 }
  0x1e   :  { %423 = vmatpush.bf16.msra.mxu3 %v392_v7  ;;  %422 = vmatpush.bf16.msra.mxu2 %v392_v7 }
  0x1f   :  { %190 = vmatpush.bf16.msra.mxu0 %v392_v7 }
  0x21   :  { %216 = vmatmul.bf16.vlgmr.msra.gmra.mxu3 %v405_v8  ;;  %201 = vmatmul.bf16.vlgmr.msra.gmra.mxu2 %v402_v9 }
  0x22   :  { %191 = vmatmul.bf16.vlgmr.msra.gmra.mxu0 %v400_v10 }
  0x31   :  { %221 = vmatmul.bf16.gmra.mxu3 %v406_v11  ;;  %206 = vmatmul.bf16.gmra.mxu2 %v403_v12 }
  0x32   :  { %196 = vmatmul.bf16.gmra.mxu0 %v401_v13 }
  0x41   :  { %226 = vmatmul.bf16.gmra.mxu3 %v407_v14  ;;  %211 = vmatmul.bf16.gmra.mxu2 %v404_v15 }
  0x9f   :  { %v192_v24 = vpop.f32.mrf.mxu0 }
  0xa0   :  { %v283_v52 = vmax.f32 %v192_v24, 0.0 }
  0xa4   :  { %v217_v16 = vpop.f32.mrf.mxu3  ;;  %v202_v17 = vpop.f32.mrf.mxu2 }
  0xa5   :  { %v293_v37 = vmax.f32 %v217_v16, 0.0  ;;  %v287_v45 = vmax.f32 %v202_v17, 0.0 }
  0xa7   :  { %v194_v27 = vpop.f32.mrf.mxu0 }
  0xa8   :  { %v284_v53 = vmax.f32 %v194_v27, 0.0 }
  0xaa   :  { %v299_v55 = vpack.c.bf16 %v284_v53, %v283_v52 }
  0xac   :  { %v219_v18 = vpop.f32.mrf.mxu3  ;;  %v204_v19 = vpop.f32.mrf.mxu2 }
  0xad   :  { %v294_v34 = vmax.f32 %v219_v18, 0.0  ;;  %v288_v46 = vmax.f32 %v204_v19, 0.0 }
  0xaf   :  { %v197_v38 = vpop.f32.mrf.mxu0  ;;  %v304_v41 = vpack.c.bf16 %v294_v34, %v293_v37  ;;  %v301_v51 = vpack.c.bf16 %v288_v46, %v287_v45 }
  0xb0   :  { %v285_v49 = vmax.f32 %v197_v38, 0.0 }
  0xb4   :  { %v222_v20 = vpop.f32.mrf.mxu3  ;;  %v207_v21 = vpop.f32.mrf.mxu2 }
  0xb5   :  { %v295_v33 = vmax.f32 %v222_v20, 0.0  ;;  %v289_v42 = vmax.f32 %v207_v21, 0.0 }
  0xb7   :  { %v199_v48 = vpop.f32.mrf.mxu0 }
  0xb8   :  { %v286_v50 = vmax.f32 %v199_v48, 0.0 }
  0xba   :  { %v300_v54 = vpack.c.bf16 %v286_v50, %v285_v49 }
  0xbc   :  { %v224_v22 = vpop.f32.mrf.mxu3  ;;  %v209_v23 = vpop.f32.mrf.mxu2 }
  0xbd   :  { %v296_v31 = vmax.f32 %v224_v22, 0.0  ;;  %v290_v43 = vmax.f32 %v209_v23, 0.0 }
  0xbf   :  { %v305_v35 = vpack.c.bf16 %v296_v31, %v295_v33  ;;  %v302_v47 = vpack.c.bf16 %v290_v43, %v289_v42 }
  0xc4   :  { %v227_v25 = vpop.f32.mrf.mxu3  ;;  %v212_v26 = vpop.f32.mrf.mxu2 }
  0xc5   :  { %v297_v29 = vmax.f32 %v227_v25, 0.0  ;;  %v291_v39 = vmax.f32 %v212_v26, 0.0 }
  0xcc   :  { %v229_v28 = vpop.f32.mrf.mxu3  ;;  %v214_v36 = vpop.f32.mrf.mxu2 }
  0xcd   :  { %v298_v30 = vmax.f32 %v229_v28, 0.0  ;;  %v292_v40 = vmax.f32 %v214_v36, 0.0 }
  0xcf   :  { %v306_v32 = vpack.c.bf16 %v298_v30, %v297_v29  ;;  %v303_v44 = vpack.c.bf16 %v292_v40, %v291_v39 }
  0xd1   :  { %308 = vmatpush.bf16.msra.mxu1 %v306_v32 }
  0xd5   :  { %309 = vmatpush.bf16.msra.mxu1 %v305_v35 }
  0xd9   :  { %310 = vmatpush.bf16.msra.mxu1 %v304_v41 }
  0xdd   :  { %311 = vmatpush.bf16.msra.mxu1 %v303_v44 }
  0xe1   :  { %312 = vmatpush.bf16.msra.mxu1 %v302_v47 }
  0xe5   :  { %313 = vmatpush.bf16.msra.mxu1 %v301_v51 }
  0xe9   :  { %314 = vmatpush.bf16.msra.mxu1 %v300_v54 }
  0xed   :  { %315 = vmatpush.bf16.msra.mxu1 %v299_v55 }
  0xf0   :  { %316 = vmatmul.bf16.vlgmr.msra.gmra.mxu1 %v307_v56 }
 0x16d   :  { %v317_v57 = vpop.f32.mrf.mxu1 }
 0x16e   :  { %321 = vst [vmem:[%s501_s3] sm:$0x1] %v317_v57 }
 0x175   :  { %v319_v58 = vpop.f32.mrf.mxu1 }

</bundles_post_ra>
